<compile_context>
chip_gen: v7x
topology: tpu7x:2x2x1
jax: 0.10.0
libtpu: 0.0.40
codegen_flags: <defaults>
</compile_context>

<pallas_src>
import functools
import math

import jax
import jax.numpy as jnp
from jax.experimental import pallas as pl
from jax.experimental.pallas import tpu as pltpu


def _infer_kernel(x_ref, m1_ref, m2_ref,
                  w1_ref, b1_ref, w2_ref, b2_ref,
                  w3m_ref, b3m_ref,
                  mu_ref):
  """Inference path: only the mu head is computed / written."""
  x = x_ref[...].astype(jnp.float32)

  h1 = jnp.dot(x, w1_ref[...], preferred_element_type=jnp.float32) + b1_ref[...]
  h1 = jnp.maximum(h1, 0.0) * m1_ref[...]

  h2 = jnp.dot(h1, w2_ref[...], preferred_element_type=jnp.float32) + b2_ref[...]
  h2 = jnp.maximum(h2, 0.0) * m2_ref[...]

  mu_ref[...] = (jnp.dot(h2, w3m_ref[...], preferred_element_type=jnp.float32)
                 + b3m_ref[...])


def _train_kernel(x_ref, m1_ref, m2_ref,
                  w1_ref, b1_ref, w2_ref, b2_ref,
                  w3_ref, b3_ref,
                  mu_ref, std_ref,
                  *, action_size: int):
  """Training path: fused (mu, logstd) head in a single matmul."""
  x = x_ref[...].astype(jnp.float32)

  h1 = jnp.dot(x, w1_ref[...], preferred_element_type=jnp.float32) + b1_ref[...]
  h1 = jnp.maximum(h1, 0.0) * m1_ref[...]

  h2 = jnp.dot(h1, w2_ref[...], preferred_element_type=jnp.float32) + b2_ref[...]
  h2 = jnp.maximum(h2, 0.0) * m2_ref[...]

  heads = jnp.dot(h2, w3_ref[...], preferred_element_type=jnp.float32) + b3_ref[...]
  mu_ref[...] = heads[:, :action_size]
  logstd = jnp.clip(heads[:, action_size:], -10.0, 10.0)
  std_ref[...] = jnp.exp(logstd)


def _dropout_masks(seed, batch, layers_size, drop_prob):
  """PyTorch-equivalent inverted-scaling dropout masks (training=True).

  NOTE: MC-dropout callers must pass a different seed per stochastic forward
  pass; reusing a seed reuses the exact same masks.
  """
  p = float(drop_prob)
  if p <= 0.0:
    ones = jnp.ones((batch, layers_size), jnp.float32)
    return ones, ones
  key = jax.random.PRNGKey(seed)
  k1, k2 = jax.random.split(key)
  scale = jnp.float32(1.0 / (1.0 - p))
  m1 = jnp.where(jax.random.uniform(k1, (batch, layers_size)) >= p, scale, 0.0)
  m2 = jnp.where(jax.random.uniform(k2, (batch, layers_size)) >= p, scale, 0.0)
  return m1.astype(jnp.float32), m2.astype(jnp.float32)


def two_head_dqn_forward(params, x, seed, drop_prob, is_training=False,
                         batch_tile=256):
  """params: dict of already-transposed weights ([in,out]) and (1,out) biases."""
  batch, states_size = x.shape
  layers_size = params["w1"].shape[1]
  action_size = params["w3_mu"].shape[1]

  m1, m2 = _dropout_masks(seed, batch, layers_size, drop_prob)

  # Batch tile: full batch when small (block == full dim is always legal),
  # otherwise a multiple-of-8 tile so x/masks/outputs pipeline over the grid.
  tb = batch if batch <= batch_tile else batch_tile
  grid = (pl.cdiv(batch, tb),)

  row_map = lambda i: (i, 0)     # per-tile rows
  const_map = lambda i: (0, 0)   # weights/biases resident across the grid

  x_spec = pl.BlockSpec((tb, states_size), row_map)
  m_spec = pl.BlockSpec((tb, layers_size), row_map)
  w1_spec = pl.BlockSpec(params["w1"].shape, const_map)
  b1_spec = pl.BlockSpec(params["b1"].shape, const_map)
  w2_spec = pl.BlockSpec(params["w2"].shape, const_map)
  b2_spec = pl.BlockSpec(params["b2"].shape, const_map)
  out_spec = pl.BlockSpec((tb, action_size), row_map)

  cparams = pltpu.CompilerParams(dimension_semantics=("parallel",))

  if is_training:
    # Fuse the two heads into one matmul (concat along the output axis).
    w3 = jnp.concatenate([params["w3_mu"], params["w3_logstd"]], axis=1)
    b3 = jnp.concatenate([params["b3_mu"], params["b3_logstd"]], axis=1)
    kernel = functools.partial(_train_kernel, action_size=int(action_size))
    mu, std = pl.pallas_call(
        kernel,
        grid=grid,
        out_shape=(
            jax.ShapeDtypeStruct((batch, action_size), jnp.float32),
            jax.ShapeDtypeStruct((batch, action_size), jnp.float32),
        ),
        in_specs=[x_spec, m_spec, m_spec,
                  w1_spec, b1_spec, w2_spec, b2_spec,
                  pl.BlockSpec(w3.shape, const_map),
                  pl.BlockSpec(b3.shape, const_map)],
        out_specs=(out_spec, out_spec),
        compiler_params=cparams,
    )(x, m1, m2,
      params["w1"], params["b1"], params["w2"], params["b2"], w3, b3)
    return mu, std

  mu = pl.pallas_call(
      _infer_kernel,
      grid=grid,
      out_shape=jax.ShapeDtypeStruct((batch, action_size), jnp.float32),
      in_specs=[x_spec, m_spec, m_spec,
                w1_spec, b1_spec, w2_spec, b2_spec,
                pl.BlockSpec(params["w3_mu"].shape, const_map),
                pl.BlockSpec(params["b3_mu"].shape, const_map)],
      out_specs=out_spec,
      compiler_params=cparams,
  )(x, m1, m2,
    params["w1"], params["b1"], params["w2"], params["b2"],
    params["w3_mu"], params["b3_mu"])
  return mu


def init_params(key, states_size, layers_size, action_size):
  """Deterministic init mirroring the PyTorch module:
  xavier_uniform_ on weights, default nn.Linear bias init
  U(-1/sqrt(fan_in), 1/sqrt(fan_in)). Weights returned transposed ([in, out]);
  biases as (1, out)."""
  def xavier(key, fan_in, fan_out):
    bound = math.sqrt(6.0 / (fan_in + fan_out))
    w = jax.random.uniform(key, (fan_out, fan_in), jnp.float32, -bound, bound)
    return jnp.transpose(w)

  def bias(key, fan_in, fan_out):
    bound = 1.0 / math.sqrt(fan_in)
    return jax.random.uniform(key, (1, fan_out), jnp.float32, -bound, bound)

  ks = jax.random.split(key, 8)
  return {
      "w1": xavier(ks[0], states_size, layers_size),
      "b1": bias(ks[1], states_size, layers_size),
      "w2": xavier(ks[2], layers_size, layers_size),
      "b2": bias(ks[3], layers_size, layers_size),
      "w3_mu": xavier(ks[4], layers_size, action_size),
      "b3_mu": bias(ks[5], layers_size, action_size),
      "w3_logstd": xavier(ks[6], layers_size, action_size),
      "b3_logstd": bias(ks[7], layers_size, action_size),
  }


if __name__ == "__main__":
  # Small, module-consistent shapes.
  batch = 2
  states_size = 16
  layers_size = 32
  action_size = 4
  drop_prob = 0.1

  key = jax.random.PRNGKey(0)
  pkey, xkey = jax.random.split(key)
  params = init_params(pkey, states_size, layers_size, action_size)
  x = jax.random.normal(xkey, (batch, states_size), dtype=jnp.float32)

  # Inference path (is_training=False) -> q-values [batch, action_size]
  q = two_head_dqn_forward(params, x, seed=1234, drop_prob=drop_prob,
                           is_training=False)
  jax.block_until_ready(q)

  # Training path: (mu, exp(logstd)); different seed = different MC-dropout mask.
  mu, std = two_head_dqn_forward(params, x, seed=5678, drop_prob=drop_prob,
                                 is_training=True)
  jax.block_until_ready((mu, std))

  assert q.shape == (batch, action_size)
  assert mu.shape == (batch, action_size) and std.shape == (batch, action_size)
  assert bool(jnp.all(std > 0))
  assert bool(jnp.all(jnp.isfinite(q))) and bool(jnp.all(jnp.isfinite(mu)))
  print("KERNEL_OK")
</pallas_src>

<mosaic_0001>
module attributes {stable_mosaic.version = 11 : i64} {
  func.func @_infer_kernel(%arg0: i32, %arg1: memref<2x16xf32, #tpu.memory_space<vmem>>, %arg2: memref<2x32xf32, #tpu.memory_space<vmem>>, %arg3: memref<2x32xf32, #tpu.memory_space<vmem>>, %arg4: memref<16x32xf32, #tpu.memory_space<vmem>>, %arg5: memref<1x32xf32, #tpu.memory_space<vmem>>, %arg6: memref<32x32xf32, #tpu.memory_space<vmem>>, %arg7: memref<1x32xf32, #tpu.memory_space<vmem>>, %arg8: memref<32x4xf32, #tpu.memory_space<vmem>>, %arg9: memref<1x4xf32, #tpu.memory_space<vmem>>, %arg10: memref<2x4xf32, #tpu.memory_space<vmem>>) attributes {dimension_semantics = [#tpu.dimension_semantics<parallel>], iteration_bounds = array<i64: 1>, scalar_prefetch = 0 : i64, scratch_operands = 0 : i64, tpu.core_type = #tpu.core_type<tc>, window_params = [{transform_indices = @transform_0, window_bounds = array<i64: 2, 16>}, {transform_indices = @transform_1, window_bounds = array<i64: 2, 32>}, {transform_indices = @transform_2, window_bounds = array<i64: 2, 32>}, {pipeline_mode = #tpu.pipeline_mode<synchronous>, transform_indices = @transform_3, window_bounds = array<i64: 16, 32>}, {pipeline_mode = #tpu.pipeline_mode<synchronous>, transform_indices = @transform_4, window_bounds = array<i64: 1, 32>}, {pipeline_mode = #tpu.pipeline_mode<synchronous>, transform_indices = @transform_5, window_bounds = array<i64: 32, 32>}, {pipeline_mode = #tpu.pipeline_mode<synchronous>, transform_indices = @transform_6, window_bounds = array<i64: 1, 32>}, {pipeline_mode = #tpu.pipeline_mode<synchronous>, transform_indices = @transform_7, window_bounds = array<i64: 32, 4>}, {pipeline_mode = #tpu.pipeline_mode<synchronous>, transform_indices = @transform_8, window_bounds = array<i64: 1, 4>}, {transform_indices = @transform_9, window_bounds = array<i64: 2, 4>}]} {
    %c0 = arith.constant 0 : index
    %c0_0 = arith.constant 0 : index
    %0 = vector.load %arg1[%c0, %c0_0] : memref<2x16xf32, #tpu.memory_space<vmem>>, vector<2x16xf32>
    %c0_1 = arith.constant 0 : index
    %c0_2 = arith.constant 0 : index
    %1 = vector.load %arg4[%c0_1, %c0_2] : memref<16x32xf32, #tpu.memory_space<vmem>>, vector<16x32xf32>
    %cst = arith.constant dense<0.000000e+00> : vector<2x32xf32>
    %2 = tpu.matmul %0, %1, %cst {dimension_numbers = #tpu.dot_dimension_numbers<[1], [0], [0], [1], [0, 0, 1, 1], [], []>} : vector<2x16xf32>, vector<16x32xf32>, vector<2x32xf32> -> vector<2x32xf32>
    %c0_3 = arith.constant 0 : index
    %c0_4 = arith.constant 0 : index
    %3 = vector.load %arg5[%c0_3, %c0_4] : memref<1x32xf32, #tpu.memory_space<vmem>>, vector<1x32xf32>
    %4 = vector.broadcast %3 : vector<1x32xf32> to vector<2x32xf32>
    %5 = arith.addf %2, %4 : vector<2x32xf32>
    %cst_5 = arith.constant 0.000000e+00 : f32
    %6 = vector.broadcast %cst_5 : f32 to vector<2x32xf32>
    %7 = arith.maximumf %5, %6 : vector<2x32xf32>
    %c0_6 = arith.constant 0 : index
    %c0_7 = arith.constant 0 : index
    %8 = vector.load %arg2[%c0_6, %c0_7] : memref<2x32xf32, #tpu.memory_space<vmem>>, vector<2x32xf32>
    %9 = arith.mulf %7, %8 : vector<2x32xf32>
    %c0_8 = arith.constant 0 : index
    %c0_9 = arith.constant 0 : index
    %10 = vector.load %arg6[%c0_8, %c0_9] : memref<32x32xf32, #tpu.memory_space<vmem>>, vector<32x32xf32>
    %cst_10 = arith.constant dense<0.000000e+00> : vector<2x32xf32>
    %11 = tpu.matmul %9, %10, %cst_10 {dimension_numbers = #tpu.dot_dimension_numbers<[1], [0], [0], [1], [0, 0, 1, 1], [], []>} : vector<2x32xf32>, vector<32x32xf32>, vector<2x32xf32> -> vector<2x32xf32>
    %c0_11 = arith.constant 0 : index
    %c0_12 = arith.constant 0 : index
    %12 = vector.load %arg7[%c0_11, %c0_12] : memref<1x32xf32, #tpu.memory_space<vmem>>, vector<1x32xf32>
    %13 = vector.broadcast %12 : vector<1x32xf32> to vector<2x32xf32>
    %14 = arith.addf %11, %13 : vector<2x32xf32>
    %cst_13 = arith.constant 0.000000e+00 : f32
    %15 = vector.broadcast %cst_13 : f32 to vector<2x32xf32>
    %16 = arith.maximumf %14, %15 : vector<2x32xf32>
    %c0_14 = arith.constant 0 : index
    %c0_15 = arith.constant 0 : index
    %17 = vector.load %arg3[%c0_14, %c0_15] : memref<2x32xf32, #tpu.memory_space<vmem>>, vector<2x32xf32>
    %18 = arith.mulf %16, %17 : vector<2x32xf32>
    %c0_16 = arith.constant 0 : index
    %c0_17 = arith.constant 0 : index
    %19 = vector.load %arg8[%c0_16, %c0_17] : memref<32x4xf32, #tpu.memory_space<vmem>>, vector<32x4xf32>
    %cst_18 = arith.constant dense<0.000000e+00> : vector<2x4xf32>
    %20 = tpu.matmul %18, %19, %cst_18 {dimension_numbers = #tpu.dot_dimension_numbers<[1], [0], [0], [1], [0, 0, 1, 1], [], []>} : vector<2x32xf32>, vector<32x4xf32>, vector<2x4xf32> -> vector<2x4xf32>
    %c0_19 = arith.constant 0 : index
    %c0_20 = arith.constant 0 : index
    %21 = vector.load %arg9[%c0_19, %c0_20] : memref<1x4xf32, #tpu.memory_space<vmem>>, vector<1x4xf32>
    %22 = vector.broadcast %21 : vector<1x4xf32> to vector<2x4xf32>
    %23 = arith.addf %20, %22 : vector<2x4xf32>
    %c0_21 = arith.constant 0 : index
    %c0_22 = arith.constant 0 : index
    %24 = vector.load %arg10[%c0_21, %c0_22] : memref<2x4xf32, #tpu.memory_space<vmem>>, vector<2x4xf32>
    tpu.vector_store %arg10[%c0_21, %c0_22], %23 {strides = array<i32>} : memref<2x4xf32, #tpu.memory_space<vmem>>, vector<2x4xf32>,
    return
  }
  func.func @transform_0(%arg0: i32) -> (i32, i32) {
    %c0_i32 = arith.constant 0 : i32
    %c0_i32_0 = arith.constant 0 : i32
    return %arg0, %c0_i32 : i32, i32
  }
  func.func @transform_1(%arg0: i32) -> (i32, i32) {
    %c0_i32 = arith.constant 0 : i32
    %c0_i32_0 = arith.constant 0 : i32
    return %arg0, %c0_i32 : i32, i32
  }
  func.func @transform_2(%arg0: i32) -> (i32, i32) {
    %c0_i32 = arith.constant 0 : i32
    %c0_i32_0 = arith.constant 0 : i32
    return %arg0, %c0_i32 : i32, i32
  }
  func.func @transform_3(%arg0: i32) -> (i32, i32) {
    %c0_i32 = arith.constant 0 : i32
    %c0_i32_0 = arith.constant 0 : i32
    %c0_i32_1 = arith.constant 0 : i32
    return %c0_i32, %c0_i32_0 : i32, i32
  }
  func.func @transform_4(%arg0: i32) -> (i32, i32) {
    %c0_i32 = arith.constant 0 : i32
    %c0_i32_0 = arith.constant 0 : i32
    %c0_i32_1 = arith.constant 0 : i32
    return %c0_i32, %c0_i32_0 : i32, i32
  }
  func.func @transform_5(%arg0: i32) -> (i32, i32) {
    %c0_i32 = arith.constant 0 : i32
    %c0_i32_0 = arith.constant 0 : i32
    %c0_i32_1 = arith.constant 0 : i32
    return %c0_i32, %c0_i32_0 : i32, i32
  }
  func.func @transform_6(%arg0: i32) -> (i32, i32) {
    %c0_i32 = arith.constant 0 : i32
    %c0_i32_0 = arith.constant 0 : i32
    %c0_i32_1 = arith.constant 0 : i32
    return %c0_i32, %c0_i32_0 : i32, i32
  }
  func.func @transform_7(%arg0: i32) -> (i32, i32) {
    %c0_i32 = arith.constant 0 : i32
    %c0_i32_0 = arith.constant 0 : i32
    %c0_i32_1 = arith.constant 0 : i32
    return %c0_i32, %c0_i32_0 : i32, i32
  }
  func.func @transform_8(%arg0: i32) -> (i32, i32) {
    %c0_i32 = arith.constant 0 : i32
    %c0_i32_0 = arith.constant 0 : i32
    %c0_i32_1 = arith.constant 0 : i32
    return %c0_i32, %c0_i32_0 : i32, i32
  }
  func.func @transform_9(%arg0: i32) -> (i32, i32) {
    %c0_i32 = arith.constant 0 : i32
    %c0_i32_0 = arith.constant 0 : i32
    return %arg0, %c0_i32 : i32, i32
  }
}

</mosaic_0001>

<bundles_post_ra>
// kernel: tpu_custom_call.1
= control target key start
LH: loop header
LB: loop body
LE: loop exit
PB: predicated region body
PF: predicated region fallthrough
CT: control target
= control target key end

     0   :  { %14 = vsyncpa [#allocation3], 0  ;;  %s611_s0 = inlined_call_operand.vmem [shape: f32[2,16], index: 0, kind: input, shape index: {}]   ;;  %s612_s1 = inlined_call_operand.vmem [shape: f32[2,32], index: 1, kind: input, shape index: {}]   ;;  %s613_s2 = inlined_call_operand.vmem [shape: f32[2,32], index: 2, kind: input, shape index: {}]   ;;  %s614_s3 = inlined_call_operand.vmem [shape: f32[16,32], index: 3, kind: input, shape index: {}]   ;;  %s615_s4 = inlined_call_operand.hbm [shape: f32[1,32], index: 4, kind: input, shape index: {}]   ;;  %s616_s5 = inlined_call_operand.vmem [shape: f32[32,32], index: 5, kind: input, shape index: {}]   ;;  %s617_s6 = inlined_call_operand.hbm [shape: f32[1,32], index: 6, kind: input, shape index: {}]   ;;  %s618_s7 = inlined_call_operand.vmem [shape: f32[32,4], index: 7, kind: input, shape index: {}]   ;;  %s619_s8 = inlined_call_operand.vmem [shape: f32[1,4], index: 8, kind: input, shape index: {}]   ;;  %s620_s9 = inlined_call_operand.hbm [shape: f32[2,4], index: 9, kind: output, shape index: {}]  }
   0x1   :  { %15 = vsyncpa [#allocation6], 0 }
   0x2   :  { %16 = vsyncpa [#allocation4], 0  ;;  %s475_s30 = smov [#allocation2]   ;;  %s476_s11 = smov [#allocation5]  }
   0x3   :  { %s31_s10 = sshll.u32 %s475_s30, 4  ;;  %s43_s12 = sshll.u32 %s476_s11, 4  ;;  %s32_s10 = int_to_ptr.vmem [resolvable:$true] %s31_s10  ;;  %s44_s12 = int_to_ptr.vmem [resolvable:$true] %s43_s12 }
   0x4   :  { %s403_s15 = scalar_lea.hbm %s615_s4, 16 }
   0x5   :  { %p404_p0 = scmp.ne.s32.totalorder %s615_s4, %s403_s15  ;;  %p407_p1 = scmp.lt.u32.totalorder %s403_s15, %s615_s4 }
   0x7   :  { %p409_p2 = pnand %p407_p1, %p404_p0 }
   0x9   :  { %412 = shalt.err (!%p409_p2)
}
   0xa   :  { %s413_s20 = scalar_lea.vmem %s32_s10, 16  ;;  %s417_s21 = scalar_lea.vmem %s32_s10, 32 }
   0xb   :  { %p414_p3 = scmp.ne.s32.totalorder %s32_s10, %s413_s20  ;;  %p418_p4 = scmp.lt.s32.totalorder %s32_s10, %s32_s10 }
   0xc   :  { %p419_p5 = scmp.lt.s32.totalorder %s417_s21, %s413_s20 }
   0xe   :  { %p420_p6 = por %p419_p5, %p418_p4 }
  0x10   :  { %p421_p7 = pnand %p420_p6, %p414_p3 }
  0x12   :  { %424 = shalt.err (!%p421_p7)
}
  0x13   :  { %34 = dma.hbm_to_vmem [thread:$0]  %s615_s4, 16, %s32_s10, [#allocation3]  }
  0x14   :  { %s425_s26 = scalar_lea.hbm %s617_s6, 16 }
  0x15   :  { %p426_p8 = scmp.ne.s32.totalorder %s617_s6, %s425_s26  ;;  %p429_p9 = scmp.lt.u32.totalorder %s425_s26, %s617_s6 }
  0x17   :  { %p431_p10 = pnand %p429_p9, %p426_p8 }
  0x19   :  { %434 = shalt.err (!%p431_p10)
}
  0x1a   :  { %s435_s11 = scalar_lea.vmem %s44_s12, 16  ;;  %s439_s13 = scalar_lea.vmem %s44_s12, 32 }
  0x1b   :  { %p436_p11 = scmp.ne.s32.totalorder %s44_s12, %s435_s11  ;;  %p440_p12 = scmp.lt.s32.totalorder %s44_s12, %s44_s12 }
  0x1c   :  { %p441_p13 = scmp.lt.s32.totalorder %s439_s13, %s435_s11 }
  0x1e   :  { %p442_p0 = por %p441_p13, %p440_p12 }
  0x20   :  { %p443_p1 = pnand %p442_p0, %p436_p11 }
  0x22   :  { %446 = shalt.err (!%p443_p1)
}
  0x23   :  { %46 = dma.hbm_to_vmem [thread:$0]  %s617_s6, 16, %s44_s12, [#allocation6]  }
  0x24   :  { %469 = dma.done.wait [#allocation3], 16  }
  0x25   :  { %470 = vsyncadd [#allocation3], 4294967280 }
  0x26   :  { %471 = dma.done.wait [#allocation6], 16  }
  0x27   :  { %472 = vsyncadd [#allocation6], 4294967280  ;;  %v477_v0 = vmov 0.0|0.0   ;;  %vm478_vm0 = vmmov 0   ;;  %v479_v1 = vmov 0.0   ;;  %v58_v2 = vld [vmem:[%s614_s3] sm:$0xff] }
  0x28   :  { %382 = vmatprep.subr.bf16.mxu0 %v477_v0  ;;  %357 = vmatprep.mubr.msk.f32.mxu0 %vm478_vm0, %v479_v1  ;;  %v59_v3 = vld [vmem:[%s614_s3 + $0x8] sm:$0xff]  ;;  %v57_v5 = vld [vmem:[%s611_s0] sm:$0x3]  ;;  %vm67_vm1 = vcmask 130048   ;;  %v146_v9 = vld [vmem:[%s616_s5 + $0x10] sm:$0xff]  ;;  %vm155_vm2 = vcmask 261120  }
  0x29   :  { %385 = vmatprep.subr.bf16.mxu1 %v477_v0  ;;  %368 = vmatprep.mubr.msk.f32.mxu1 %vm478_vm0, %v479_v1  ;;  %v383_v4 = vpack.c.bf16 %v59_v3, %v58_v2  ;;  %v144_v6 = vld [vmem:[%s616_s5] sm:$0xff]  ;;  %v145_v7 = vld [vmem:[%s616_s5 + $0x8] sm:$0xff]  ;;  %v147_v10 = vld [vmem:[%s616_s5 + $0x18] sm:$0xff]  ;;  %s480_s15 = smov [#allocation7]   ;;  %vm316_vm3 = vcmask 25600  }
  0x2a   :  { %v386_v8 = vpack.c.bf16 %v145_v7, %v144_v6  ;;  %v389_v11 = vpack.c.bf16 %v147_v10, %v146_v9  ;;  %v334_v12 = vld [vmem:[#allocation2] ss:$0 sm:$0xff]  ;;  %v233_v20 = vld [vmem:[%s618_s7 + $0x8] sm:$0xff]  ;;  %v234_v22 = vld [vmem:[%s618_s7 + $0x10] sm:$0xff] }
  0x2b   :  { %384 = vmatpush3.bf16.msra.mxu0 %v383_v4  ;;  %v142_v16 = vld [vmem:[%s612_s1] sm:$0x3]  ;;  %v235_v23 = vld [vmem:[%s618_s7 + $0x18] sm:$0xff]  ;;  %v336_v25 = vld [vmem:[#allocation5] ss:$0 sm:$0xff] }
  0x2c   :  { %391 = vmatprep.subr.bf16.mxu0 %v477_v0  ;;  %387 = vmatpush3.bf16.msra.mxu1 %v386_v8  ;;  %v232_v19 = vld [vmem:[%s618_s7] sm:$0xff]  ;;  %v395_v24 = vpack.c.bf16 %v235_v23, %v234_v22  ;;  %s324_s7 = sshll.u32 %s480_s15, 4  ;;  %s325_s7 = int_to_ptr.vmem [resolvable:$true] %s324_s7 }
  0x2d   :  { %388 = vmatprep.subr.bf16.mxu1 %v477_v0  ;;  %v392_v21 = vpack.c.bf16 %v233_v20, %v232_v19  ;;  %v230_v29 = vld [vmem:[%s613_s2] sm:$0x3]  ;;  %s447_s16 = scalar_lea.vmem %s325_s7, 32  ;;  %p452_p3 = scmp.lt.s32.totalorder %s325_s7, %s325_s7 }
  0x2e   :  { %358 = vmatmul.mubr.msk.f32.vlgmr.msra.gmra.mrb[0].mxu0 %vm67_vm1, %v57_v5  ;;  %v338_v32 = vld [vmem:[%s619_s8] ss:$0 sm:$0xff]  ;;  %p448_p2 = scmp.ne.s32.totalorder %s325_s7, %s447_s16  ;;  %p453_p4 = scmp.lt.s32.totalorder %s447_s16, %s447_s16 }
  0x2f   :  { %379 = vmatprep.mubr.msk.f32.mxu0 %vm478_vm0, %v479_v1  ;;  %393 = vmatpush3.bf16.msra.mxu0 %v392_v21 }
  0x30   :  { %390 = vmatpush3.bf16.msra.mxu1 %v389_v11  ;;  %394 = vmatprep.subr.bf16.mxu0 %v477_v0  ;;  %p454_p5 = por %p453_p4, %p452_p3 }
  0x32   :  { %p455_p6 = pnand %p454_p5, %p448_p2 }
  0x33   :  { %396 = vmatpush3.bf16.msra.mxu0 %v395_v24 }
 0x101   :  { %v137_v13 = vpop.f32.mrb[0].mxu0 }
 0x102   :  { %v138_v14 = vadd.f32 %v334_v12, %v137_v13  ;;  %v359_v15 = vpop.f32.mrb[1].mxu0 }
 0x104   :  { %v141_v17 = vmax.f32 %v138_v14, 0.0 }
 0x106   :  { %v143_v18 = vmul.f32 %v142_v16, %v141_v17 }
 0x108   :  { %369 = vmatmul.mubr.msk.f32.vlgmr.msra.gmra.mrb[0].mxu1 %vm155_vm2, %v143_v18 }
 0x1db   :  { %v225_v26 = vpop.f32.mrb[0].mxu1 }
 0x1dc   :  { %v226_v27 = vadd.f32 %v336_v25, %v225_v26  ;;  %v370_v28 = vpop.f32.mrb[1].mxu1 }
 0x1de   :  { %v229_v30 = vmax.f32 %v226_v27, 0.0 }
 0x1e0   :  { %v231_v31 = vmul.f32 %v230_v29, %v229_v30 }
 0x1e2   :  { %380 = vmatmul.mubr.msk.f32.vlgmr.msra.gmra.mrb[2].mxu0 %vm155_vm2, %v231_v31 }
 0x2b5   :  { %v312_v33 = vpop.f32.mrb[2].mxu0 }
 0x2b6   :  { %v313_v34 = vadd.f32 %v338_v32, %v312_v33  ;;  %v381_v35 = vpop.f32.mrb[3].mxu0 }
 0x2b8   :  { %317 = vst.msk [vmem:[#allocation7] sm:$0x3] %vm316_vm3, %v313_v34 }
 0x2b9   :  { %458 = shalt.err (!%p455_p6)
}
 0x2ba   :  { %s459_s6 = scalar_lea.hbm %s620_s9, 32 }
 0x2bb   :  { %p460_p7 = scmp.ne.s32.totalorder %s620_s9, %s459_s6  ;;  %p463_p8 = scmp.lt.u32.totalorder %s459_s6, %s620_s9 }
 0x2bd   :  { %p465_p9 = pnand %p463_p8, %p460_p7 }
 0x2bf   :  { %468 = shalt.err (!%p465_p9)
}
 0x2c0   :  { %327 = dma.vmem_to_hbm [thread:$0]  %s325_s7, 32, %s620_s9, [#allocation4]  }
 0x2c1   :  { %473 = dma.done.wait [#allocation4], 32  }
 0x2c2   :  { %474 = vsyncadd [#allocation4], 4294967264 }
 0x2c3   :  { %331 = vsyncpa [#allocation3], 1 }
 0x2c4   :  { %332 = vsyncpa [#allocation6], 1 }
 0x2c5   :  { %333 = vsyncpa [#allocation4], 1 }

</bundles_post_ra>
